<compile_context>
chip_gen: v7x
topology: tpu7x:2x2x1
jax: 0.10.0
libtpu: 0.0.40
codegen_flags: <defaults>
</compile_context>

<pallas_src>
import functools

import numpy as np
import jax
import jax.numpy as jnp
from jax.experimental import pallas as pl
from jax.experimental.pallas import tpu as pltpu

# ---- module hyper-parameters (small, consistent with the module defaults) ----
RAY_HIDDEN = 32       # ray_hidden_dim
OUT_DIM = 6           # out_dim
TARGET_HIDDEN = 8     # target_hidden_dim
N_KERNELS = 4         # n_kernels
KERNEL_SIZE = (3, 3)  # kernel_size, len == n_conv_layers
N_CONV = 2            # n_conv_layers
N_HIDDEN = 1          # n_hidden
N_TASKS = 2           # n_tasks
LATENT = 25           # hard-coded `latent = 25` in the module

LANE = 128            # TPU lane width
N_SPLIT = 2           # parallel grid steps over the fused-head (N) axis
MAX_TM = 512          # output tile-row cap (VMEM stays well under v5e's 16 MiB default)


def _round_up(x, m):
    return (x + m - 1) // m * m


def head_layout():
    """Names and output dims of every hypernet head, in forward() emission order."""
    names, dims = [], []
    names.append("conv0.weights"); dims.append(N_KERNELS * KERNEL_SIZE[0] ** 2)
    names.append("conv0.bias");    dims.append(N_KERNELS)
    for i in range(1, N_CONV):
        p = 2 ** (i - 1) * N_KERNELS
        c = 2 ** i * N_KERNELS
        names.append(f"conv{i}.weights"); dims.append(c * p * KERNEL_SIZE[i] ** 2)
        names.append(f"conv{i}.bias");    dims.append(c)
    c_last = 2 ** (N_CONV - 1) * N_KERNELS
    for _ in range(N_HIDDEN):
        names.append("hidden0.weights"); dims.append(TARGET_HIDDEN * c_last * LATENT)
        names.append("hidden0.bias");    dims.append(TARGET_HIDDEN)
    for j in range(N_TASKS):
        names.append(f"task{j}.weights"); dims.append(TARGET_HIDDEN * OUT_DIM)
        names.append(f"task{j}.bias");    dims.append(OUT_DIM)
    return names, dims


NAMES, DIMS = head_layout()
OFFSETS = []
_off = 0
for _d in DIMS:
    OFFSETS.append(_off)
    _off += _d
TOTAL = _off                                   # 2052
TOTAL_PAD = _round_up(TOTAL, N_SPLIT * LANE)   # 2304 = 18 * 128
TN = TOTAL_PAD // N_SPLIT                      # 1152 lanes per grid step


def linear_init(key, fan_in, fan_out):
    """PyTorch nn.Linear default init: U(-1/sqrt(fan_in), 1/sqrt(fan_in))."""
    kw, kb = jax.random.split(key)
    bound = 1.0 / float(fan_in) ** 0.5
    w = jax.random.uniform(kw, (fan_in, fan_out), jnp.float32, -bound, bound)
    b = jax.random.uniform(kb, (fan_out,), jnp.float32, -bound, bound)
    return w, b


def make_params(key):
    """Float32 parameters mirroring the PyTorch module (heads fused, unfolded)."""
    keys = jax.random.split(key, 3 + len(NAMES))
    params = {}
    params["mlp_w1"], params["mlp_b1"] = linear_init(keys[0], 2, RAY_HIDDEN)
    params["mlp_w2"], params["mlp_b2"] = linear_init(keys[1], RAY_HIDDEN, RAY_HIDDEN)
    params["mlp_w3"], params["mlp_b3"] = linear_init(keys[2], RAY_HIDDEN, RAY_HIDDEN)
    w_heads, b_heads = [], []
    for k, d in zip(keys[3:], DIMS):
        w, b = linear_init(k, RAY_HIDDEN, d)
        w_heads.append(w)
        b_heads.append(b)
    params["heads_w"] = jnp.concatenate(w_heads, axis=1)   # (H, TOTAL)
    params["heads_b"] = jnp.concatenate(b_heads, axis=0)   # (TOTAL,)
    return params


def prepare_kernel_params(params):
    """ONE-TIME preparation (call when params change, never per forward):
    fold ray_mlp layer 3 into the fused heads, pad to lane multiples and cast
    the MXU weights to bf16 (first-layer weights / biases stay f32)."""
    # (f2 @ w3 + b3) @ Wh + bh  ==  f2 @ (w3 @ Wh) + (b3 @ Wh + bh)
    wh = params["mlp_w3"] @ params["heads_w"]                        # (H, TOTAL)
    bh = params["mlp_b3"] @ params["heads_w"] + params["heads_b"]    # (TOTAL,)
    wh_pad = jnp.zeros((RAY_HIDDEN, TOTAL_PAD), jnp.float32).at[:, :TOTAL].set(wh)
    bh_pad = jnp.zeros((TOTAL_PAD,), jnp.float32).at[:TOTAL].set(bh)
    kp = {
        "w1": params["mlp_w1"][:, None, :],          # (2, 1, H) f32 -> VPU layer 1
        "b1": params["mlp_b1"][None, :],             # (1, H)    f32
        "w2": params["mlp_w2"].astype(jnp.bfloat16), # (H, H)    bf16
        "b2": params["mlp_b2"][None, :],             # (1, H)    f32
        "wh": wh_pad.astype(jnp.bfloat16),           # (H, TOTAL_PAD) bf16
        "bh": bh_pad[None, :],                       # (1, TOTAL_PAD) f32
    }
    return kp


# ------------------------------- Pallas kernel --------------------------------
def hypernet_kernel(ray_ref, w1_ref, b1_ref, w2_ref, b2_ref, wh_ref, bh_ref, out_ref):
    # ray_mlp layer 1 (2 -> H) on the VPU: two broadcast FMAs + bias, no MXU pass.
    # ray_ref: (2, tm, 1) f32 ; w1_ref: (2, 1, H) f32.
    f = ray_ref[0] * w1_ref[0] + ray_ref[1] * w1_ref[1] + b1_ref[...]
    f = jnp.maximum(f, 0.0)
    # ray_mlp layer 2 (H -> H): bf16 weights on the MXU, f32 accumulation.
    f = jnp.dot(f.astype(jnp.bfloat16), w2_ref[...],
                preferred_element_type=jnp.float32)
    f = jnp.maximum(f + b2_ref[...], 0.0)
    # all hypernet heads (+ folded ray_mlp layer 3): one wide lane-dense matmul.
    out = jnp.dot(f.astype(jnp.bfloat16), wh_ref[...],
                  preferred_element_type=jnp.float32) + bh_ref[...]
    out_ref[...] = out.astype(out_ref.dtype)


# ------------------------------- wrappers --------------------------------------
def _flat_padded(kp, rays, out_dtype):
    """rays: (B, 2) -> padded (m_pad, TOTAL_PAD) slab via one pallas_call."""
    B = rays.shape[0]
    m_steps = pl.cdiv(B, MAX_TM)                       # M grid steps
    tm = _round_up(pl.cdiv(B, m_steps), 8)             # <= 8 wasted rows total
    m_pad = tm * m_steps

    rays = rays.astype(jnp.float32)
    ray_cols = jnp.zeros((2, m_pad, 1), jnp.float32).at[:, :B, 0].set(rays.T)

    vmem = pltpu.MemorySpace.VMEM
    const = lambda j, i: (0, 0)

    flops = 2 * m_pad * (2 * RAY_HIDDEN
                         + RAY_HIDDEN * RAY_HIDDEN
                         + RAY_HIDDEN * TOTAL_PAD)
    bytes_accessed = (
        ray_cols.size * 4
        + kp["w1"].size * 4
        + (kp["w2"].size + kp["wh"].size) * 2                      # bf16 weights
        + (kp["b1"].size + kp["b2"].size + kp["bh"].size) * 4      # f32 biases
        + m_pad * TOTAL_PAD * np.dtype(out_dtype).itemsize         # output
    )

    return pl.pallas_call(
        hypernet_kernel,
        out_shape=jax.ShapeDtypeStruct((m_pad, TOTAL_PAD), out_dtype),
        # N axis first (outermost) so wh/bh are DMA'd only N_SPLIT times; both
        # axes "parallel" so v7x can shard them across its two TensorCores.
        grid=(N_SPLIT, m_steps),
        in_specs=[
            pl.BlockSpec((2, tm, 1), lambda j, i: (0, i, 0), memory_space=vmem),
            pl.BlockSpec((2, 1, RAY_HIDDEN), lambda j, i: (0, 0, 0), memory_space=vmem),
            pl.BlockSpec((1, RAY_HIDDEN), const, memory_space=vmem),
            pl.BlockSpec((RAY_HIDDEN, RAY_HIDDEN), const, memory_space=vmem),
            pl.BlockSpec((1, RAY_HIDDEN), const, memory_space=vmem),
            pl.BlockSpec((RAY_HIDDEN, TN), lambda j, i: (0, j), memory_space=vmem),
            pl.BlockSpec((1, TN), lambda j, i: (0, j), memory_space=vmem),
        ],
        out_specs=pl.BlockSpec((tm, TN), lambda j, i: (i, j), memory_space=vmem),
        compiler_params=pltpu.CompilerParams(
            dimension_semantics=("parallel", "parallel")),
        cost_estimate=pl.CostEstimate(
            flops=flops, transcendentals=0, bytes_accessed=bytes_accessed),
    )(ray_cols, kp["w1"], kp["b1"], kp["w2"], kp["b2"], kp["wh"], kp["bh"])


@functools.partial(jax.jit, static_argnames=("out_dtype",))
def hypernet_forward_flat(kp, rays, out_dtype=jnp.float32):
    """rays: (B, 2) -> flat (B, TOTAL) slab.  Index heads with OFFSETS / DIMS
    downstream (avoids 12 narrow column slices on the critical path)."""
    return _flat_padded(kp, rays, out_dtype)[: rays.shape[0], :TOTAL]


@jax.jit
def hypernet_forward_batch(kp, rays):
    """rays: (B, 2) -> dict of (B, d) generated weight/bias rows (module keys)."""
    flat = _flat_padded(kp, rays, jnp.float32)[: rays.shape[0], :TOTAL]
    return {n: flat[:, o:o + d] for n, o, d in zip(NAMES, OFFSETS, DIMS)}


def hypernet_forward(kp, ray):
    """Single ray (2,) -> dict of 1-D generated vectors (module semantics)."""
    batch_out = hypernet_forward_batch(kp, ray[None, :])
    return {k: v[0] for k, v in batch_out.items()}


# ------------------------------ references -------------------------------------
def hypernet_reference_flat(params, ray):
    """Pure-f32 flat reference matching the PyTorch module (no fold, no bf16)."""
    f = jnp.maximum(ray @ params["mlp_w1"] + params["mlp_b1"], 0.0)
    f = jnp.maximum(f @ params["mlp_w2"] + params["mlp_b2"], 0.0)
    f = f @ params["mlp_w3"] + params["mlp_b3"]
    return f @ params["heads_w"] + params["heads_b"]


def hypernet_reference(params, ray):
    flat = hypernet_reference_flat(params, ray)
    return {n: flat[o:o + d] for n, o, d in zip(NAMES, OFFSETS, DIMS)}


def hypernet_quantized_reference(kp, ray):
    """Same math as the kernel (VPU first layer, folded layer 3, bf16 matmuls)."""
    f = ray[0] * kp["w1"][0, 0] + ray[1] * kp["w1"][1, 0] + kp["b1"][0]
    f = jnp.maximum(f, 0.0)
    f = jnp.dot(f.astype(jnp.bfloat16), kp["w2"], preferred_element_type=jnp.float32)
    f = jnp.maximum(f + kp["b2"][0], 0.0)
    flat = jnp.dot(f.astype(jnp.bfloat16), kp["wh"],
                   preferred_element_type=jnp.float32) + kp["bh"][0]
    flat = flat[:TOTAL]
    return {n: flat[o:o + d] for n, o, d in zip(NAMES, OFFSETS, DIMS)}


if __name__ == "__main__":
    key = jax.random.PRNGKey(0)
    kparam, kray = jax.random.split(key)
    params = make_params(kparam)
    kp = prepare_kernel_params(params)   # hoisted: runs ONCE, not per forward

    # ---- single ray (exactly the module's forward(ray)) ----
    ray = jax.random.uniform(kray, (2,), jnp.float32)
    out = hypernet_forward(kp, ray)
    jax.block_until_ready(out)

    # tight check against a reference doing the identical (folded, bf16) math
    qref = hypernet_quantized_reference(kp, ray)
    # loose check against the full-f32 module semantics (bf16 weights ~1e-3 level)
    ref = hypernet_reference(params, ray)
    for name in NAMES:
        assert out[name].shape == qref[name].shape, name
        assert jnp.allclose(out[name], qref[name], rtol=1e-3, atol=1e-3), name
        assert jnp.allclose(out[name], ref[name], rtol=3e-2, atol=3e-2), name

    # ---- small ray batch through the same kernel ----
    rays = jax.random.uniform(jax.random.PRNGKey(1), (16, 2), jnp.float32)
    bout = hypernet_forward_batch(kp, rays)
    jax.block_until_ready(bout)
    for b in (0, 7, 15):
        refb = hypernet_reference(params, rays[b])
        for name in NAMES:
            assert bout[name].shape[0] == rays.shape[0], name
            assert jnp.allclose(bout[name][b], refb[name], rtol=3e-2, atol=3e-2), name

    # ---- large batch, bf16 output (HBM-write-bound regime), flat slab API ----
    big = jax.random.uniform(jax.random.PRNGKey(2), (600, 2), jnp.float32)
    flat16 = hypernet_forward_flat(kp, big, out_dtype=jnp.bfloat16)
    jax.block_until_ready(flat16)
    assert flat16.shape == (600, TOTAL) and flat16.dtype == jnp.bfloat16
    ref0 = hypernet_reference_flat(params, big[0])
    assert jnp.allclose(flat16[0].astype(jnp.float32), ref0, rtol=5e-2, atol=5e-2)

    print("KERNEL_OK")
</pallas_src>

<mosaic_0001>
module attributes {stable_mosaic.version = 11 : i64} {
  func.func @hypernet_kernel(%arg0: i32, %arg1: i32, %arg2: memref<2x8x1xf32, #tpu.memory_space<vmem>>, %arg3: memref<2x1x32xf32, #tpu.memory_space<vmem>>, %arg4: memref<1x32xf32, #tpu.memory_space<vmem>>, %arg5: memref<32x32xbf16, #tpu.memory_space<vmem>>, %arg6: memref<1x32xf32, #tpu.memory_space<vmem>>, %arg7: memref<32x1152xbf16, #tpu.memory_space<vmem>>, %arg8: memref<1x1152xf32, #tpu.memory_space<vmem>>, %arg9: memref<8x1152xf32, #tpu.memory_space<vmem>>) attributes {dimension_semantics = [#tpu.dimension_semantics<parallel>, #tpu.dimension_semantics<parallel>], iteration_bounds = array<i64: 2, 1>, scalar_prefetch = 0 : i64, scratch_operands = 0 : i64, tpu.core_type = #tpu.core_type<tc>, window_params = [{transform_indices = @transform_0, window_bounds = array<i64: 2, 8, 1>}, {pipeline_mode = #tpu.pipeline_mode<synchronous>, transform_indices = @transform_1, window_bounds = array<i64: 2, 1, 32>}, {pipeline_mode = #tpu.pipeline_mode<synchronous>, transform_indices = @transform_2, window_bounds = array<i64: 1, 32>}, {pipeline_mode = #tpu.pipeline_mode<synchronous>, transform_indices = @transform_3, window_bounds = array<i64: 32, 32>}, {pipeline_mode = #tpu.pipeline_mode<synchronous>, transform_indices = @transform_4, window_bounds = array<i64: 1, 32>}, {transform_indices = @transform_5, window_bounds = array<i64: 32, 1152>}, {transform_indices = @transform_6, window_bounds = array<i64: 1, 1152>}, {transform_indices = @transform_7, window_bounds = array<i64: 8, 1152>}]} {
    %c0 = arith.constant 0 : index
    %c0_0 = arith.constant 0 : index
    %c0_1 = arith.constant 0 : index
    %0 = vector.load %arg2[%c0, %c0_0, %c0_1] : memref<2x8x1xf32, #tpu.memory_space<vmem>>, vector<1x8x1xf32>
    %1 = vector.shape_cast %0 : vector<1x8x1xf32> to vector<8x1xf32>
    %c0_2 = arith.constant 0 : index
    %c0_3 = arith.constant 0 : index
    %c0_4 = arith.constant 0 : index
    %2 = vector.load %arg3[%c0_2, %c0_3, %c0_4] : memref<2x1x32xf32, #tpu.memory_space<vmem>>, vector<1x1x32xf32>
    %3 = vector.shape_cast %2 : vector<1x1x32xf32> to vector<1x32xf32>
    %4 = vector.broadcast %1 : vector<8x1xf32> to vector<8x32xf32>
    %5 = vector.broadcast %3 : vector<1x32xf32> to vector<8x32xf32>
    %6 = arith.mulf %4, %5 : vector<8x32xf32>
    %c1 = arith.constant 1 : index
    %c0_5 = arith.constant 0 : index
    %c0_6 = arith.constant 0 : index
    %7 = vector.load %arg2[%c1, %c0_5, %c0_6] : memref<2x8x1xf32, #tpu.memory_space<vmem>>, vector<1x8x1xf32>
    %8 = vector.shape_cast %7 : vector<1x8x1xf32> to vector<8x1xf32>
    %c1_7 = arith.constant 1 : index
    %c0_8 = arith.constant 0 : index
    %c0_9 = arith.constant 0 : index
    %9 = vector.load %arg3[%c1_7, %c0_8, %c0_9] : memref<2x1x32xf32, #tpu.memory_space<vmem>>, vector<1x1x32xf32>
    %10 = vector.shape_cast %9 : vector<1x1x32xf32> to vector<1x32xf32>
    %11 = vector.broadcast %8 : vector<8x1xf32> to vector<8x32xf32>
    %12 = vector.broadcast %10 : vector<1x32xf32> to vector<8x32xf32>
    %13 = arith.mulf %11, %12 : vector<8x32xf32>
    %14 = arith.addf %6, %13 : vector<8x32xf32>
    %c0_10 = arith.constant 0 : index
    %c0_11 = arith.constant 0 : index
    %15 = vector.load %arg4[%c0_10, %c0_11] : memref<1x32xf32, #tpu.memory_space<vmem>>, vector<1x32xf32>
    %16 = vector.broadcast %15 : vector<1x32xf32> to vector<8x32xf32>
    %17 = arith.addf %14, %16 : vector<8x32xf32>
    %cst = arith.constant 0.000000e+00 : f32
    %18 = vector.broadcast %cst : f32 to vector<8x32xf32>
    %19 = arith.maximumf %17, %18 : vector<8x32xf32>
    %20 = arith.truncf %19 : vector<8x32xf32> to vector<8x32xbf16>
    %c0_12 = arith.constant 0 : index
    %c0_13 = arith.constant 0 : index
    %21 = vector.load %arg5[%c0_12, %c0_13] : memref<32x32xbf16, #tpu.memory_space<vmem>>, vector<32x32xbf16>
    %cst_14 = arith.constant dense<0.000000e+00> : vector<8x32xf32>
    %22 = tpu.matmul %20, %21, %cst_14 {dimension_numbers = #tpu.dot_dimension_numbers<[1], [0], [0], [1], [0, 0, 1, 1], [], []>} : vector<8x32xbf16>, vector<32x32xbf16>, vector<8x32xf32> -> vector<8x32xf32>
    %c0_15 = arith.constant 0 : index
    %c0_16 = arith.constant 0 : index
    %23 = vector.load %arg6[%c0_15, %c0_16] : memref<1x32xf32, #tpu.memory_space<vmem>>, vector<1x32xf32>
    %24 = vector.broadcast %23 : vector<1x32xf32> to vector<8x32xf32>
    %25 = arith.addf %22, %24 : vector<8x32xf32>
    %cst_17 = arith.constant 0.000000e+00 : f32
    %26 = vector.broadcast %cst_17 : f32 to vector<8x32xf32>
    %27 = arith.maximumf %25, %26 : vector<8x32xf32>
    %28 = arith.truncf %27 : vector<8x32xf32> to vector<8x32xbf16>
    %c0_18 = arith.constant 0 : index
    %c0_19 = arith.constant 0 : index
    %29 = vector.load %arg7[%c0_18, %c0_19] : memref<32x1152xbf16, #tpu.memory_space<vmem>>, vector<32x1152xbf16>
    %cst_20 = arith.constant dense<0.000000e+00> : vector<8x1152xf32>
    %30 = tpu.matmul %28, %29, %cst_20 {dimension_numbers = #tpu.dot_dimension_numbers<[1], [0], [0], [1], [0, 0, 1, 1], [], []>} : vector<8x32xbf16>, vector<32x1152xbf16>, vector<8x1152xf32> -> vector<8x1152xf32>
    %c0_21 = arith.constant 0 : index
    %c0_22 = arith.constant 0 : index
    %31 = vector.load %arg8[%c0_21, %c0_22] : memref<1x1152xf32, #tpu.memory_space<vmem>>, vector<1x1152xf32>
    %32 = vector.broadcast %31 : vector<1x1152xf32> to vector<8x1152xf32>
    %33 = arith.addf %30, %32 : vector<8x1152xf32>
    %c0_23 = arith.constant 0 : index
    %c0_24 = arith.constant 0 : index
    %34 = vector.load %arg9[%c0_23, %c0_24] : memref<8x1152xf32, #tpu.memory_space<vmem>>, vector<8x1152xf32>
    tpu.vector_store %arg9[%c0_23, %c0_24], %33 {strides = array<i32>} : memref<8x1152xf32, #tpu.memory_space<vmem>>, vector<8x1152xf32>,
    return
  }
  func.func @transform_0(%arg0: i32, %arg1: i32) -> (i32, i32, i32) {
    %c0_i32 = arith.constant 0 : i32
    %c0_i32_0 = arith.constant 0 : i32
    %c0_i32_1 = arith.constant 0 : i32
    return %c0_i32, %arg1, %c0_i32_0 : i32, i32, i32
  }
  func.func @transform_1(%arg0: i32, %arg1: i32) -> (i32, i32, i32) {
    %c0_i32 = arith.constant 0 : i32
    %c0_i32_0 = arith.constant 0 : i32
    %c0_i32_1 = arith.constant 0 : i32
    %c0_i32_2 = arith.constant 0 : i32
    return %c0_i32, %c0_i32_0, %c0_i32_1 : i32, i32, i32
  }
  func.func @transform_2(%arg0: i32, %arg1: i32) -> (i32, i32) {
    %c0_i32 = arith.constant 0 : i32
    %c0_i32_0 = arith.constant 0 : i32
    %c0_i32_1 = arith.constant 0 : i32
    return %c0_i32, %c0_i32_0 : i32, i32
  }
  func.func @transform_3(%arg0: i32, %arg1: i32) -> (i32, i32) {
    %c0_i32 = arith.constant 0 : i32
    %c0_i32_0 = arith.constant 0 : i32
    %c0_i32_1 = arith.constant 0 : i32
    return %c0_i32, %c0_i32_0 : i32, i32
  }
  func.func @transform_4(%arg0: i32, %arg1: i32) -> (i32, i32) {
    %c0_i32 = arith.constant 0 : i32
    %c0_i32_0 = arith.constant 0 : i32
    %c0_i32_1 = arith.constant 0 : i32
    return %c0_i32, %c0_i32_0 : i32, i32
  }
  func.func @transform_5(%arg0: i32, %arg1: i32) -> (i32, i32) {
    %c0_i32 = arith.constant 0 : i32
    %c0_i32_0 = arith.constant 0 : i32
    return %c0_i32, %arg0 : i32, i32
  }
  func.func @transform_6(%arg0: i32, %arg1: i32) -> (i32, i32) {
    %c0_i32 = arith.constant 0 : i32
    %c0_i32_0 = arith.constant 0 : i32
    return %c0_i32, %arg0 : i32, i32
  }
  func.func @transform_7(%arg0: i32, %arg1: i32) -> (i32, i32) {
    %c0_i32 = arith.constant 0 : i32
    return %arg1, %arg0 : i32, i32
  }
}

</mosaic_0001>

<bundles_post_ra>
// kernel: hypernet_forward_batch.1
= control target key start
LH: loop header
LB: loop body
LE: loop exit
PB: predicated region body
PF: predicated region fallthrough
CT: control target
= control target key end

     0   :  { %12 = vsyncpa [#allocation3], 0  ;;  %s1652_s0 = inlined_call_operand.vmem [shape: f32[2,8,1], index: 0, kind: input, shape index: {}]   ;;  %s1653_s1 = inlined_call_operand.vmem [shape: f32[2,1,32], index: 1, kind: input, shape index: {}]   ;;  %s1654_s2 = inlined_call_operand.hbm [shape: f32[1,32], index: 2, kind: input, shape index: {}]   ;;  %s1655_s3 = inlined_call_operand.vmem [shape: bf16[32,32], index: 3, kind: input, shape index: {}]   ;;  %s1656_s4 = inlined_call_operand.hbm [shape: f32[1,32], index: 4, kind: input, shape index: {}]   ;;  %s1657_s5 = inlined_call_operand.hbm [shape: bf16[32,2304], index: 5, kind: input, shape index: {}]   ;;  %s1658_s6 = inlined_call_operand.vmem [shape: f32[1,2304], index: 6, kind: input, shape index: {}]   ;;  %s1659_s7 = inlined_call_operand.vmem [shape: f32[8,2304], index: 7, kind: output, shape index: {}]  }
   0x1   :  { %13 = vsyncpa [#allocation5], 0  ;;  %s1383_s24 = smov 0   ;;  %s1385_s25 = smov 0  }
   0x2   :  { %s1387_s26 = smov 0   ;;  %s1389_s27 = smov 0  }
   0x3   :  { %s1391_s28 = smov 0   ;;  %s1393_s29 = smov 0  }
   0x4 LB: > { %s1665_s30 = sadd.s32 4294967295, %s1332_s29   ;;  %s148_s8 = sadd.s32 1, %s1320_s26  ;;  %s1332_s29 = sphi %s1393_s29, %s19_s29   ;;  %s1328_s28 = sphi %s1391_s28, %s1680_s28   ;;  %s1324_s27 = sphi %s1389_s27, %s1679_s27   ;;  %s1320_s26 = sphi %s1387_s26, %s1678_s26   ;;  %s1316_s25 = sphi %s1385_s25, %s1677_s25   ;;  %s1312_s24 = sphi %s1383_s24, %s1676_s24  }
   0x5   : > { %p155_p0 = scmp.ne.s32.totalorder %s1320_s26, %s1316_s25  ;;  %p156_p1 = scmp.eq.s32.totalorder %s1332_s29, 0 }
   0x6   : > { %p161_p2 = scmp.ne.s32.totalorder %s1316_s25, %s1312_s24  ;;  %p1419_p3 = scmp.eq.s32.totalorder %s1665_s30, 0 }
   0x7   : > { %p157_p4 = por %p156_p1, %p155_p0  ;;  %p1007_p5 = scmp.ge.s32.totalorder %s1332_s29, 1 }
   0x8   : > { %s1666_s9 = scalar_select %p1419_p3, 1, 0 }
   0x9   : > { %p1426_p6 = por %p1419_p3, %p161_p2  ;;  %p226_p7 = scmp.lt.s32.totalorder %s1332_s29, 3 }
   0xa   : > { %s1334_s12 = smov [#allocation2]   ;;  %p1100_p10 = scmp.lt.s32.totalorder %s1332_s29, 2 }
   0xb   : > { %s1667_s10 = scalar_select %p1426_p6, 1, 0 }
   0xc   : > { %p1431_p8 = pnand %p1007_p5, %p226_p7  ;;  %s249_s13 = sshll.u32 %s1334_s12, 4  ;;  %s250_s13 = int_to_ptr.vmem [resolvable:$true] %s249_s13 }
   0xd   : > { %p1444_p12 = pnand %p1100_p10, %p157_p4  ;;  %s1335_s16 = smov [#allocation4]  }
   0xe   : > { %s1668_s11 = scalar_select %p1431_p8, 1, 0 }
   0xf   : > { %p1087_p9 = pneg %p1431_p8  ;;  %s263_s17 = sshll.u32 %s1335_s16, 4  ;;  %s264_s17 = int_to_ptr.vmem [resolvable:$true] %s263_s17 }
  0x10   : > { %s1670_s15 = scalar_select %p1444_p12, 1, 0 }
  0x11   : > { %p1440_p11 = pnand %p1087_p9, %p1419_p3  ;;  %s1188_s20 = scalar_lea.hbm %s1654_s2, 16 }
  0x12   : > { %p1189_p13 = scmp.ne.s32.totalorder %s1654_s2, %s1188_s20  ;;  %p1195_p4 = scmp.lt.u32.totalorder %s1188_s20, %s1654_s2 }
  0x13   : > { %p1190_p0 = pneg %p1440_p11 }
  0x15   : > { %p1191_p1 = pnand %p1190_p0, %p1189_p13 }
  0x17   : > { %p1192_p2 = pneg %p1191_p1 }
  0x19   : > { %p1197_p5 = pnand %p1195_p4, %p1192_p2 }
  0x1b   : > { %1200 = shalt.err (!%p1197_p5)
}
  0x1c   : > { %s1201_s12 = scalar_lea.vmem %s250_s13, 16  ;;  %s1208_s16 = scalar_lea.vmem %s250_s13, 32 }
  0x1d   : > { %p1202_p7 = scmp.ne.s32.totalorder %s250_s13, %s1201_s12  ;;  %p1209_p6 = scmp.lt.s32.totalorder %s250_s13, %s250_s13 }
  0x1e   : > { %p1210_p3 = scmp.lt.s32.totalorder %s1208_s16, %s1201_s12 }
  0x1f   : > { %p1204_p9 = pnand %p1202_p7, %p1190_p0 }
  0x20   : > { %p1211_p8 = por %p1210_p3, %p1209_p6 }
  0x21   : > { %p1205_p10 = pneg %p1204_p9 }
  0x23   : > { %p1212_p12 = pnand %p1211_p8, %p1205_p10 }
  0x25   : > { %1215 = shalt.err (!%p1212_p12)
}
  0x26   : > { %1090 = dma.hbm_to_vmem [thread:$0]  (!%p1440_p11), %s1654_s2, 16, %s250_s13, [#allocation3]  }
  0x27   : > { %s31_s20 = sadd.s32 1, %s1328_s28  ;;  %s1216_s23 = scalar_lea.hbm %s1656_s4, 16 }
  0x28   : > { %p1217_p3 = scmp.ne.s32.totalorder %s1656_s4, %s1216_s23  ;;  %p1223_p12 = scmp.lt.u32.totalorder %s1216_s23, %s1656_s4 }
  0x2a   : > { %p1219_p6 = pnand %p1217_p3, %p1190_p0 }
  0x2c   : > { %p1220_p8 = pneg %p1219_p6 }
  0x2e   : > { %p1225_p13 = pnand %p1223_p12, %p1220_p8 }
  0x30   : > { %1228 = shalt.err (!%p1225_p13)
}
  0x31   : > { %s1229_s13 = scalar_lea.vmem %s264_s17, 16  ;;  %s1236_s18 = scalar_lea.vmem %s264_s17, 32 }
  0x32   : > { %p1230_p1 = scmp.ne.s32.totalorder %s264_s17, %s1229_s13  ;;  %p1237_p5 = scmp.lt.s32.totalorder %s264_s17, %s264_s17 }
  0x33   : > { %p1238_p7 = scmp.lt.s32.totalorder %s1236_s18, %s1229_s13 }
  0x34   : > { %p1232_p2 = pnand %p1230_p1, %p1190_p0 }
  0x35   : > { %p1239_p9 = por %p1238_p7, %p1237_p5 }
  0x36   : > { %p1233_p4 = pneg %p1232_p2 }
  0x38   : > { %p1240_p10 = pnand %p1239_p9, %p1233_p4 }
  0x3a   : > { %1243 = shalt.err (!%p1240_p10)
}
  0x3b   : > { %1093 = dma.hbm_to_vmem [thread:$0]  (!%p1440_p11), %s1656_s4, 16, %s264_s17, [#allocation5]  }
  0x3c   : > { %p33_p0 = scmp.ge.s32.totalorder %s31_s20, 2  ;;  %s274_s21 = sand.u32 1, %s1332_s29  }
  0x3d   : > { %s276_s22 = sand.u32 1, %s1320_s26   ;;  %s1052_s24 = smul.u32 576, %s1328_s28 }
  0x3e   : > { %s1682_s20 = smov (%p33_p0, %s31_s20), 0  ;;  %s1075_s23 = smul.u32 144, %s276_s22 }
  0x3f   : > { %s145_s14 = ssub.s32 %s1328_s28, %s1682_s20  ;;  %s1501_s13 = scalar_lea.hbm %s1657_s5, %s1052_s24 }
  0x40   : > { %p146_p3 = scmp.eq.s32.totalorder %s145_s14, 0  ;;  %s278_s17 = scalar_lea.vmem [#allocation6], %s1075_s23 }
  0x41   : > { %s285_s18 = sshll.u32 %s278_s17, 4  ;;  %s1510_s19 = scalar_lea.sflag [#allocation3], %s274_s21  ;;  %s1508_s18 = int_to_ptr.vmem [resolvable:$true] %s285_s18 }
  0x42   : > { %s1506_s30 = scalar_select %p146_p3, %s1320_s26, %s148_s8  }
  0x43   : > { %s1244_s22 = scalar_lea.hbm %s1501_s13, 2304  ;;  %p1671_p6 = scmp.ne.s32.totalorder %s1670_s15, 0 }
  0x44   : > { %p1245_p11 = scmp.ne.s32.totalorder %s1501_s13, %s1244_s22  ;;  %s1249_s23 = scalar_lea.hbm %s1657_s5, 4608 }
  0x45   : > { %p1246_p8 = pneg %p1671_p6  ;;  %p1250_p1 = scmp.lt.u32.totalorder %s1501_s13, %s1657_s5 }
  0x46   : > { %p1251_p2 = scmp.lt.u32.totalorder %s1249_s23, %s1244_s22  ;;  %p1253_p5 = scmp.lt.u32.totalorder %s1244_s22, %s1501_s13 }
  0x47   : > { %p1247_p12 = pnand %p1246_p8, %p1245_p11 }
  0x48   : > { %p1252_p4 = por %p1251_p2, %p1250_p1 }
  0x49   : > { %p1248_p13 = pneg %p1247_p12 }
  0x4a   : > { %p1254_p7 = por %p1253_p5, %p1252_p4 }
  0x4c   : > { %p1255_p9 = pnand %p1254_p7, %p1248_p13 }
  0x4e   : > { %1258 = shalt.err (!%p1255_p9)
}
  0x4f   : > { %s1259_s8 = scalar_lea.vmem %s1508_s18, 2304  ;;  %s1336_s21 = smov [#allocation6]  }
  0x50   : > { %p1260_p10 = scmp.ne.s32.totalorder %s1508_s18, %s1259_s8  ;;  %s1264_s17 = sshll.u32 %s1336_s21, 4  ;;  %s1265_s17 = int_to_ptr.vmem [resolvable:$false] %s1264_s17 }
  0x51   : > { %s1266_s14 = scalar_lea.vmem %s1265_s17, 4608  ;;  %p1267_p11 = scmp.lt.s32.totalorder %s1508_s18, %s1265_s17 }
  0x52   : > { %p1262_p0 = pnand %p1260_p10, %p1246_p8  ;;  %p1268_p12 = scmp.lt.s32.totalorder %s1266_s14, %s1259_s8 }
  0x54   : > { %p1263_p3 = pneg %p1262_p0  ;;  %p1269_p1 = por %p1268_p12, %p1267_p11 }
  0x56   : > { %p1270_p2 = pnand %p1269_p1, %p1263_p3 }
  0x58   : > { %1273 = shalt.err (!%p1270_p2)
}
  0x59   : > { %s1337_s22 = smov 1152   ;;  %s1338_s24 = smov 576  }
  0x5a   : > { %s1339_s23 = smov 36   ;;  %p1672_p8 = scmp.ne.s32.totalorder %s1668_s11, 0 }
  0x5b   : > { %1097 = dma.hbm_to_vmem [thread:$0]  (!%p1671_p6), %s1501_s13, 2304, %s1508_s18, %s1510_s19, %s1337_s22, %s1338_s24, %s1339_s23  }
  0x5c   : > { %305 = sbr.rel (%p1672_p8) target bundleno = 700 (0x2bc), region = 48  ;;  %p1673_p13 = scmp.ne.s32.totalorder (!%p1672_p8), %s1666_s9, 0 }
  0x63   : > { %1299 = dma.done.wait (%p1673_p13), [#allocation3], 16  }
  0x64   : > { %1301 = vsyncadd (%p1673_p13), [#allocation3], 4294967280 }
  0x65   : > { %1303 = dma.done.wait (%p1673_p13), [#allocation5], 16  }
  0x66   : > { %1305 = vsyncadd (%p1673_p13), [#allocation5], 4294967280  ;;  %s1674_s12 = sadd.s32 4294967295, %s1332_s29   ;;  %s317_s13 = sand.u32 1, %s1316_s25  }
  0x67   : > { %s315_s15 = sand.u32 1, %s1674_s12   ;;  %s1076_s11 = smul.u32 144, %s317_s13 }
  0x68   : > { %s316_s18 = scalar_lea.sflag [#allocation3], %s315_s15  ;;  %p1675_p6 = scmp.ne.s32.totalorder %s1667_s10, 0 }
  0x69   : > { %s1551_s19 = scalar_lea.vmem [#allocation6], %s1076_s11 }
  0x6a   : > { %1307 = dma.done.wait (%p1675_p6), %s316_s18, 2304  }
  0x6b   : > { %1309 = vsyncadd (%p1675_p6), %s316_s18, 4294964992  ;;  %v1340_v0 = vmov 0   ;;  %v383_v1 = vld [vmem:[%s1652_s0] sm:$0xff]  ;;  %v1018_v2 = vld [vmem:[%s1652_s0 + $0x8] sm:$0xff]  ;;  %v1341_v4 = vmov 0.0   ;;  %vm1342_vm0 = vmmov 0   ;;  %v517_v43 = vlaneseq }
  0x6c   : > { %1159 = vset.pattern.permute.xlu0 %v1340_v0  ;;  %689 = vmatprep.mubr.bf16.mxu1 %v1340_v0  ;;  %v1160_v3 = vld [vmem:[%s1655_s3] sm:$0xff]   ;;  %v1161_v5 = vld [vmem:[%s1655_s3 + $0x8] sm:$0xff]   ;;  %vm447_vm1 = vcmask 261120   ;;  %s367_s13 = smul.u32 9, %s1324_s27 }
  0x6d   : > { %387 = vperm.xlu0 %1159, %v383_v1   ;;  %1059 = vmatprep.subr.bf16.mxu0 %v1341_v4  ;;  %v1162_v6 = vld [vmem:[%s1551_s19 + $0x4] ss:$36 sps:$4 sm:$0xff]   ;;  %v1167_v8 = vld [vmem:[%s1551_s19 + $0xc] ss:$36 sps:$4 sm:$0xff]   ;;  %v1173_v22 = vld [vmem:[%s1551_s19 + $0x54] ss:$36 sps:$4 sm:$0xff]  }
  0x6e   : > { %1060 = vmatpush3.bf16.msra.mxu0 %v1160_v3  ;;  %1063 = vmatprep.mubr.msk.bf16.mxu0 %vm1342_vm0, %v1341_v4  ;;  %v1164_v7 = vld [vmem:[%s1551_s19] ss:$36 sps:$4 sm:$0xff]   ;;  %v1017_v10 = vld [vmem:[%s1653_s1] ss:$0 sm:$0xff]  ;;  %v1020_v11 = vld [vmem:[%s1653_s1 + $0x1] ss:$0 sm:$0xff] }
  0x6f   : > { %1061 = vmatprep.subr.bf16.mxu0 %v1341_v4  ;;  %657 = vmatprep.subr.bf16.mxu1 %v1162_v6  ;;  %v1021_v15 = vld [vmem:[#allocation2] ss:$0 sm:$0xff]  ;;  %v1171_v24 = vld [vmem:[%s1551_s19 + $0x50] ss:$36 sps:$4 sm:$0xff]   ;;  %v1022_v27 = vld [vmem:[#allocation4] ss:$0 sm:$0xff] }
  0x70   : > { %658 = vmatpush1.bf16.msra.mxu1 %v1164_v7  ;;  %v1165_v19 = vld [vmem:[%s1551_s19 + $0x8] ss:$36 sps:$4 sm:$0xff]   ;;  %v1176_v25 = vld [vmem:[%s1551_s19 + $0x14] ss:$36 sps:$4 sm:$0xff]   ;;  %v1179_v26 = vld [vmem:[%s1551_s19 + $0x1c] ss:$36 sps:$4 sm:$0xff]  }
  0x71   : > { %403 = vperm.xlu0 %1159, %v1018_v2   ;;  %v1168_v21 = vld [vmem:[%s1551_s19 + $0x4c] ss:$36 sps:$4 sm:$0xff]   ;;  %v1177_v35 = vld [vmem:[%s1551_s19 + $0x18] ss:$36 sps:$4 sm:$0xff]   ;;  %v1185_v38 = vld [vmem:[%s1551_s19 + $0x64] ss:$36 sps:$4 sm:$0xff]  }
  0x72   : > { %1062 = vmatpush3.bf16.msra.mxu0 %v1161_v5  ;;  %v1170_v23 = vld [vmem:[%s1551_s19 + $0x48] ss:$36 sps:$4 sm:$0xff]   ;;  %659 = vmatprep.subr.bf16.mxu1 %v1168_v21  ;;  %v1174_v34 = vld [vmem:[%s1551_s19 + $0x10] ss:$36 sps:$4 sm:$0xff]   ;;  %v1182_v37 = vld [vmem:[%s1551_s19 + $0x5c] ss:$36 sps:$4 sm:$0xff]  }
  0x73   : > { %698 = vmatprep.subr.bf16.mxu0 %v1167_v8  ;;  %v1180_v39 = vld [vmem:[%s1551_s19 + $0x58] ss:$36 sps:$4 sm:$0xff]   ;;  %v1183_v40 = vld [vmem:[%s1551_s19 + $0x60] ss:$36 sps:$4 sm:$0xff]   ;;  %v1187_v42 = vld [vmem:[%s1551_s19 + $0x68] ss:$36 sps:$4 sm:$0xff]  }
  0x74   : > { %660 = vmatpush1.bf16.msra.mxu1 %v1170_v23  ;;  %v1186_v41 = vld [vmem:[%s1551_s19 + $0x20] ss:$36 sps:$4 sm:$0xff]   ;;  %p368_p4 = scmp.lt.s32.totalorder %s367_s13, 17  ;;  %v518_v44 = vshrl.u32 %v517_v43, 7 }
  0x75   : > { %739 = vmatprep.subr.bf16.mxu1 %v1176_v25 }
  0x76   : > { %s1684_s13 = smov (!%p368_p4, %s367_s13), 17  ;;  %v519_v45 = vsub.s32 0, %v518_v44  ;;  %v527_v46 = vsub.s32 2, %v518_v44  ;;  %v523_v48 = vsub.s32 1, %v518_v44  ;;  %v531_v49 = vsub.s32 3, %v518_v44 }
  0x77   : > { %s1616_s9 = scalar_lea.vmem %s1658_s6, %s1684_s13  ;;  %s1016_s19 = sshll.u32 %s1684_s13, 3  ;;  %v535_v60 = vsub.s32 4, %v518_v44  ;;  %v543_v61 = vsub.s32 6, %v518_v44  ;;  %v539_v2 = vsub.s32 5, %v518_v44  ;;  %v547_v3 = vsub.s32 7, %v518_v44 }
  0x78   : > { %v513_v47 = vld [vmem:[%s1616_s9] sm:$0xff]  ;;  %s1622_s8 = scalar_lea.vmem %s1659_s7, %s1016_s19 }
  0x79   : > { %v520_v50 = vrot.slane %v513_v47, %v519_v45  ;;  %v528_v51 = vrot.slane %v513_v47, %v527_v46  ;;  %v524_v52 = vrot.slane %v513_v47, %v523_v48  ;;  %v532_v53 = vrot.slane %v513_v47, %v531_v49 }
  0x7a   : > { %v536_v6 = vrot.slane %v513_v47, %v535_v60  ;;  %v544_v7 = vrot.slane %v513_v47, %v543_v61  ;;  %v540_v8 = vrot.slane %v513_v47, %v539_v2 }
  0xec   : > { %v388_v9 = vpop.permute.xlu0 %387 }
  0xed   : > { %v396_v13 = vmul.f32 %v1017_v10, %v388_v9  ;;  %v548_v9 = vrot.slane %v513_v47, %v547_v3 }
  0xf0   : > { %v404_v12 = vpop.permute.xlu0 %403 }
  0xf1   : > { %v412_v14 = vmul.f32 %v1020_v11, %v404_v12 }
  0xf3   : > { %v413_v16 = vadd.f32 %v412_v14, %v396_v13 }
  0xf5   : > { %v421_v17 = vadd.f32 %v1021_v15, %v413_v16 }
  0xf7   : > { %v422_v18 = vmax.f32 %v421_v17, 0.0 }
  0xf9   : > { %v423_v20 = vpack.c.bf16 %v422_v18, %v422_v18 }
  0xfb   : > { %1064 = vmatmul.mubr.msk.bf16.vlgmr.msra.gmra.mrb[0].mxu0 %vm447_vm1, %v423_v20 }
  0xfc   : > { %699 = vmatpush1.bf16.msra.mxu0 %v1165_v19  ;;  %730 = vmatprep.mubr.bf16.mxu0 %v1340_v0 }
  0xfd   : > { %700 = vmatprep.subr.bf16.mxu0 %v1173_v22  ;;  %v1026_v22 = vld [vmem:[%s1616_s9 + $0x8] ss:$0 sm:$0xff] }
 0x100   : > { %701 = vmatpush1.bf16.msra.mxu0 %v1171_v24 }
 0x101   : > { %780 = vmatprep.subr.bf16.mxu0 %v1179_v26 }
 0x1ce   : > { %v485_v28 = vpop.f32.mrb[0].mxu0 }
 0x1cf   : > { %v486_v29 = vadd.f32 %v1022_v27, %v485_v28  ;;  %v1065_v30 = vpop.f32.mrb[1].mxu0 }
 0x1d0   : > { %v488_v31 = vpop.f32.mrb[2].mxu0 }
 0x1d1   : > { %v491_v32 = vmax.f32 %v486_v29, 0.0  ;;  %v1066_v33 = vpop.f32.mrb[3].mxu0 }
 0x1d3   : > { %v492_v36 = vpack.c.bf16 %v491_v32, %v491_v32 }
 0x1d5   : > { %1045 = vmatmul.mubr.msk.bf16.vlgmr.msra.gmra.mrb[0].mxu1 %vm447_vm1, %v492_v36  ;;  %1046 = vmatmul.mubr.msk.bf16.vlgmr.msra.gmra.mrb[4].mxu0 %vm447_vm1, %v492_v36 }
 0x1d6   : > { %740 = vmatpush1.bf16.msra.mxu1 %v1174_v34  ;;  %781 = vmatpush1.bf16.msra.mxu0 %v1177_v35 }
 0x1d7   : > { %741 = vmatprep.subr.bf16.mxu1 %v1182_v37  ;;  %782 = vmatprep.subr.bf16.mxu0 %v1185_v38 }
 0x1d8   : > { %771 = vmatprep.mubr.bf16.mxu1 %v1340_v0  ;;  %812 = vmatprep.mubr.bf16.mxu0 %v1340_v0 }
 0x1da   : > { %742 = vmatpush1.bf16.msra.mxu1 %v1180_v39  ;;  %783 = vmatpush1.bf16.msra.mxu0 %v1183_v40 }
 0x1db   : > { %1067 = vmatprep.subr.bf16.mxu1 %v1341_v4 }
 0x1dd   : > { %1047 = vmatmul.mubr.msk.bf16.vlgmr.msra.gmra.mrb[4].mxu1 %vm447_vm1, %v492_v36  ;;  %1048 = vmatmul.mubr.msk.bf16.vlgmr.msra.gmra.mrb[8].mxu0 %vm447_vm1, %v492_v36 }
 0x1de   : > { %1068 = vmatpush3.bf16.msra.mxu1 %v1186_v41  ;;  %1071 = vmatprep.mubr.msk.bf16.mxu1 %vm1342_vm0, %v1341_v4 }
 0x1df   : > { %1069 = vmatprep.subr.bf16.mxu1 %v1341_v4 }
 0x1e2   : > { %1070 = vmatpush3.bf16.msra.mxu1 %v1187_v42 }
 0x1e5   : > { %1072 = vmatmul.mubr.msk.bf16.vlgmr.msra.gmra.mrb[8].mxu1 %vm447_vm1, %v492_v36 }
 0x2a8   : > { %v691_v54 = vpop.f32.mrb[0].mxu1  ;;  %v732_v55 = vpop.f32.mrb[4].mxu0 }
 0x2a9   : > { %v692_v56 = vadd.f32 %v691_v54, %v520_v50  ;;  %v733_v57 = vadd.f32 %v732_v55, %v528_v51  ;;  %v693_v58 = vpop.f32.mrb[1].mxu1  ;;  %v734_v59 = vpop.f32.mrb[5].mxu0 }
 0x2aa   : > { %v694_v62 = vadd.f32 %v693_v58, %v524_v52  ;;  %v735_v63 = vadd.f32 %v734_v59, %v532_v53  ;;  %v695_v0 = vpop.f32.mrb[2].mxu1  ;;  %v736_v1 = vpop.f32.mrb[6].mxu0 }
 0x2ab   : > { %861 = vst [vmem:[%s1622_s8] sm:$0xff] %v692_v56  ;;  %863 = vst [vmem:[%s1622_s8 + $0x10] sm:$0xff] %v733_v57  ;;  %v696_v4 = vpop.f32.mrb[3].mxu1  ;;  %v737_v5 = vpop.f32.mrb[7].mxu0 }
 0x2ac   : > { %862 = vst [vmem:[%s1622_s8 + $0x8] sm:$0xff] %v694_v62  ;;  %864 = vst [vmem:[%s1622_s8 + $0x18] sm:$0xff] %v735_v63 }
 0x2b0   : > { %v773_v10 = vpop.f32.mrb[4].mxu1  ;;  %v814_v11 = vpop.f32.mrb[8].mxu0 }
 0x2b1   : > { %v774_v12 = vadd.f32 %v773_v10, %v536_v6  ;;  %v815_v13 = vadd.f32 %v814_v11, %v544_v7  ;;  %v775_v14 = vpop.f32.mrb[5].mxu1  ;;  %v816_v15 = vpop.f32.mrb[9].mxu0 }
 0x2b2   : > { %v776_v16 = vadd.f32 %v775_v14, %v540_v8  ;;  %v817_v17 = vadd.f32 %v816_v15, %v548_v9  ;;  %v777_v18 = vpop.f32.mrb[6].mxu1  ;;  %v818_v19 = vpop.f32.mrb[10].mxu0 }
 0x2b3   : > { %865 = vst [vmem:[%s1622_s8 + $0x20] sm:$0xff] %v774_v12  ;;  %867 = vst [vmem:[%s1622_s8 + $0x30] sm:$0xff] %v815_v13  ;;  %v778_v20 = vpop.f32.mrb[7].mxu1  ;;  %v819_v21 = vpop.f32.mrb[11].mxu0 }
 0x2b4   : > { %866 = vst [vmem:[%s1622_s8 + $0x28] sm:$0xff] %v776_v16  ;;  %868 = vst [vmem:[%s1622_s8 + $0x38] sm:$0xff] %v817_v17 }
 0x2b8   : > { %v855_v23 = vpop.f32.mrb[8].mxu1 }
 0x2b9   : > { %v856_v24 = vadd.f32 %v1026_v22, %v855_v23  ;;  %v1073_v25 = vpop.f32.mrb[9].mxu1 }
 0x2ba   : > { %v858_v26 = vpop.f32.mrb[10].mxu1 }
 0x2bb   : > { %869 = vst [vmem:[%s1622_s8 + $0x40] sm:$0xff] %v856_v24  ;;  %v1074_v27 = vpop.f32.mrb[11].mxu1 }
 0x2bc PF: > { %s19_s29 = sadd.s32 1, %s1332_s29   ;;  %s1676_s24 = smov %s1316_s25 }
 0x2bd   : > { %p16_p5 = scmp.ge.s32.totalorder %s19_s29, 4   ;;  %s1677_s25 = smov %s1320_s26 }
 0x2be   : > { %s1678_s26 = smov %s1506_s30  ;;  %s1679_s27 = smov %s1328_s28 }
 0x2bf   : > { %s1680_s28 = smov %s1682_s20  ;;  %18 = sbr.rel (!%p16_p5) target bundleno = 4 (0x4), region = 103 }
 0x2c6   :  { %900 = vsyncpa [#allocation3], 1 }
 0x2c7   :  { %902 = vsyncpa [#allocation3 + $0x1], 1 }
 0x2c8   :  { %903 = vsyncpa [#allocation5], 1 }

</bundles_post_ra>
